<compile_context>
chip_gen: v5e
topology: v5e:2x2
jax: 0.10.0
libtpu: 0.0.40
codegen_flags: <defaults>
</compile_context>

<pallas_src>
import math

import jax
import jax.numpy as jnp
from jax.experimental import pallas as pl
from jax.experimental.pallas import tpu as pltpu


# -----------------------------------------------------------------------------
# Kernel body: one (TM, TL) tile of x times a (1, TL) slice of gamma.
# Pure VPU elementwise; the kernel is HBM-bandwidth bound.
# -----------------------------------------------------------------------------
def _layer_scale_kernel(x_ref, gamma_ref, o_ref):
    o_ref[...] = x_ref[...] * gamma_ref[...]


def _vmem_capacity_bytes() -> int:
    """Physical per-core VMEM; conservative fallback = 64 MiB (v7x)."""
    try:
        return int(pltpu.get_tpu_info().vmem_capacity_bytes)
    except Exception:
        return 64 << 20


def _choose_tm(rows: int, lane_tile: int, itemsize: int,
               target_block_bytes: int) -> int:
    """Rows per block: ~target_block_bytes, sublane-aligned, and capped so the
    grid has >=2 steps when rows permit (keeps both v7x TensorCores busy)."""
    sublane = max(8, 32 // itemsize)          # f32 -> 8, bf16 -> 16, int8 -> 32
    if rows <= sublane:
        return rows                            # full extent is always legal
    tm = max(sublane, target_block_bytes // max(1, lane_tile * itemsize))
    tm = (tm // sublane) * sublane
    # Cap at ~rows/2 (sublane-aligned) so there are at least 2 grid steps.
    half = (((rows + 1) // 2) // sublane) * sublane
    if half >= sublane:
        tm = min(tm, half)
    return min(tm, rows)


def layer_scale(x: jax.Array, gamma: jax.Array, *, inplace: bool = False) -> jax.Array:
    """x: (..., D), gamma: (D,). Returns x * gamma (broadcast over last dim)."""
    orig_shape = x.shape
    D = orig_shape[-1]
    assert gamma.shape == (D,), (gamma.shape, D)

    itemsize = jnp.dtype(x.dtype).itemsize
    sublane = max(8, 32 // itemsize)
    rows = math.prod(orig_shape[:-1]) if len(orig_shape) > 1 else 1

    # --- block-size / VMEM budget (generation aware) -------------------------
    vmem_cap = _vmem_capacity_bytes() * 3 // 4        # leave physical headroom
    # ~8 MiB blocks -> 4x double-buffered (in + out) ~= 32 MiB pipelined VMEM.
    target_block_bytes = min(8 << 20, max(1 << 20, (vmem_cap - (4 << 20)) // 4))

    # NOTE: gamma preprocessing (astype / tile) is tiny but per-call; a model
    # should precompute & cache the lane-packed gamma once per parameter.
    gamma = gamma.astype(x.dtype)

    # --- lane-dense layout ----------------------------------------------------
    # Pack f = lcm(D,128)//D logical rows into one lane-dense row so output
    # stores are unmasked `vst` (largest store-side lever).
    if D % 128 == 0:
        L, f = D, 1
    else:
        Lp = math.lcm(D, 128)
        fp = Lp // D
        if Lp * sublane * itemsize <= target_block_bytes:
            L, f = Lp, fp
        else:
            # TODO(synk): pathologically wide non-128-multiple D falls back to
            # masked last-dim stores (correct, slower) rather than lane padding.
            L, f = D, 1

    if f > 1:
        total = rows * D
        rows_packed = -(-rows // f)                    # ceil(rows / f)
        padded_total = rows_packed * L
        x2d = x.reshape(total)
        if padded_total != total:
            # Pad a handful of rows so the lane-dense reshape is exact; the
            # padded region is multiplied and then sliced off.
            x2d = jnp.pad(x2d, (0, padded_total - total))
        x2d = x2d.reshape(rows_packed, L)
        gamma_lane = jnp.tile(gamma, f)
        out_rows = rows_packed
    else:
        total = padded_total = rows * D
        x2d = x.reshape(rows, L)
        gamma_lane = gamma
        out_rows = rows

    gamma2d = gamma_lane.reshape(1, L)

    # --- tiling ---------------------------------------------------------------
    # Lane-dimension guard: if one sublane-high stripe of L already exceeds the
    # block budget (very wide D), tile the lane dim too (multiples of 128).
    if L % 128 == 0 and sublane * L * itemsize > target_block_bytes:
        tl = max(128, (target_block_bytes // (sublane * itemsize)) // 128 * 128)
        tl = min(tl, L)
    else:
        tl = L

    tm = _choose_tm(out_rows, tl, itemsize, target_block_bytes)
    grid = (pl.cdiv(out_rows, tm), pl.cdiv(L, tl))

    block_bytes = tm * tl * itemsize
    # Double-buffered input + output blocks + gamma + slack, capped under
    # physical VMEM (48 MiB on v7x, 96 MiB on v5e/v6e with the 3/4 headroom).
    vmem_needed = 4 * block_bytes + 2 * tl * itemsize + (2 << 20)
    vmem_limit = int(min(max(vmem_needed, 32 << 20), vmem_cap))

    out2d = pl.pallas_call(
        _layer_scale_kernel,
        out_shape=jax.ShapeDtypeStruct((out_rows, L), x.dtype),
        grid_spec=pl.GridSpec(
            grid=grid,
            in_specs=[
                pl.BlockSpec((tm, tl), lambda i, j: (i, j)),
                # Constant row-block index -> gamma DMA'd once, VMEM resident.
                pl.BlockSpec((1, tl), lambda i, j: (0, j)),
            ],
            out_specs=pl.BlockSpec((tm, tl), lambda i, j: (i, j)),
        ),
        compiler_params=pltpu.CompilerParams(
            dimension_semantics=("parallel", "parallel"),
            vmem_limit_bytes=vmem_limit,
        ),
        # PyTorch `inplace=True` (x.mul_) -> alias x's buffer for the output.
        input_output_aliases=({0: 0} if inplace else {}),
    )(x2d, gamma2d)

    # --- undo packing / padding ------------------------------------------------
    if f > 1:
        out_flat = out2d.reshape(padded_total)
        if padded_total != total:
            out_flat = out_flat[:total]
        return out_flat.reshape(orig_shape)
    return out2d.reshape(orig_shape)

    # TODO(synk): if this LayerScale follows a matmul/attention kernel in the
    # model, fuse the multiply into that kernel's epilogue to avoid the extra
    # read+write of x entirely (this kernel is already at the HBM roofline).


if __name__ == "__main__":
    init_values = 1e-05
    key = jax.random.PRNGKey(0)

    # --- primary case: matches the module's typical (B, N, D) usage ----------
    B, N, D = 2, 8, 32
    k0, k1, k2 = jax.random.split(key, 3)
    x = jax.random.normal(k0, (B, N, D), dtype=jnp.float32)
    gamma = init_values * jnp.ones((D,), dtype=jnp.float32)

    out = jax.block_until_ready(layer_scale(x, gamma))
    ref = x * gamma
    assert out.shape == (B, N, D)
    assert jnp.allclose(out, ref, atol=1e-6, rtol=1e-6)

    # inplace=True path (PyTorch x.mul_) -> input_output_aliases wiring
    out_ip = jax.block_until_ready(layer_scale(x, gamma, inplace=True))
    assert jnp.allclose(out_ip, ref, atol=1e-6, rtol=1e-6)

    # --- rows not divisible by the packing factor (exercises the row pad) -----
    x2 = jax.random.normal(k1, (3, 5, 48), dtype=jnp.float32)   # lcm(48,128)=384, f=8
    g2 = init_values * jnp.ones((48,), dtype=jnp.float32)
    out2 = jax.block_until_ready(layer_scale(x2, g2))
    assert jnp.allclose(out2, x2 * g2, atol=1e-6, rtol=1e-6)

    # --- D already a multiple of 128, bf16 -------------------------------------
    x3 = jax.random.normal(k2, (2, 4, 256), dtype=jnp.bfloat16)
    g3 = (init_values * jnp.ones((256,), dtype=jnp.float32)).astype(jnp.bfloat16)
    out3 = jax.block_until_ready(layer_scale(x3, g3))
    assert jnp.allclose(out3.astype(jnp.float32), (x3 * g3).astype(jnp.float32),
                        atol=1e-2, rtol=1e-2)

    print("KERNEL_OK")
</pallas_src>

<mosaic_0001>
module attributes {stable_mosaic.version = 11 : i64} {
  func.func @_layer_scale_kernel(%arg0: i32, %arg1: i32, %arg2: memref<4x128xf32, #tpu.memory_space<vmem>>, %arg3: memref<1x128xf32, #tpu.memory_space<vmem>>, %arg4: memref<4x128xf32, #tpu.memory_space<vmem>>) attributes {dimension_semantics = [#tpu.dimension_semantics<parallel>, #tpu.dimension_semantics<parallel>], iteration_bounds = array<i64: 1, 1>, scalar_prefetch = 0 : i64, scratch_operands = 0 : i64, tpu.core_type = #tpu.core_type<tc>, window_params = [{transform_indices = @transform_0, window_bounds = array<i64: 4, 128>}, {transform_indices = @transform_1, window_bounds = array<i64: 1, 128>}, {transform_indices = @transform_2, window_bounds = array<i64: 4, 128>}]} {
    %c0 = arith.constant 0 : index
    %c0_0 = arith.constant 0 : index
    %0 = vector.load %arg2[%c0, %c0_0] : memref<4x128xf32, #tpu.memory_space<vmem>>, vector<4x128xf32>
    %c0_1 = arith.constant 0 : index
    %c0_2 = arith.constant 0 : index
    %1 = vector.load %arg3[%c0_1, %c0_2] : memref<1x128xf32, #tpu.memory_space<vmem>>, vector<1x128xf32>
    %2 = vector.broadcast %1 : vector<1x128xf32> to vector<4x128xf32>
    %3 = arith.mulf %0, %2 : vector<4x128xf32>
    %c0_3 = arith.constant 0 : index
    %c0_4 = arith.constant 0 : index
    %4 = vector.load %arg4[%c0_3, %c0_4] : memref<4x128xf32, #tpu.memory_space<vmem>>, vector<4x128xf32>
    tpu.vector_store %arg4[%c0_3, %c0_4], %3 {strides = array<i32>} : memref<4x128xf32, #tpu.memory_space<vmem>>, vector<4x128xf32>,
    return
  }
  func.func @transform_0(%arg0: i32, %arg1: i32) -> (i32, i32) {
    %c0_i32 = arith.constant 0 : i32
    return %arg0, %arg1 : i32, i32
  }
  func.func @transform_1(%arg0: i32, %arg1: i32) -> (i32, i32) {
    %c0_i32 = arith.constant 0 : i32
    %c0_i32_0 = arith.constant 0 : i32
    return %c0_i32, %arg1 : i32, i32
  }
  func.func @transform_2(%arg0: i32, %arg1: i32) -> (i32, i32) {
    %c0_i32 = arith.constant 0 : i32
    return %arg0, %arg1 : i32, i32
  }
}

</mosaic_0001>

<bundles_post_ra>
// kernel: tpu_custom_call.1
= control target key start
LH: loop header
LB: loop body
LE: loop exit
PB: predicated region body
PF: predicated region fallthrough
CT: control target
= control target key end

     0   :  { %7 = vsyncpa [#allocation3], 0  ;;  %s174_s0 = inlined_call_operand.hbm [shape: f32[4,128], index: 0, kind: input, shape index: {}]   ;;  %s175_s1 = inlined_call_operand.hbm [shape: f32[1,128], index: 1, kind: input, shape index: {}]   ;;  %s176_s2 = inlined_call_operand.hbm [shape: f32[4,128], index: 2, kind: output, shape index: {}]  }
   0x1   :  { %8 = vsyncpa [#allocation6], 0 }
   0x2   :  { %9 = vsyncpa [#allocation4], 0  ;;  %s15_s11 = sshll.u32 %s174_s0, 4  ;;  %s147_s12 = smov [#allocation2]   ;;  %s16_s11 = int_to_ptr.hbm [resolvable:$true] %s15_s11 }
   0x3   :  { %s17_s13 = sshll.u32 %s147_s12, 4  ;;  %s26_s16 = sshll.u32 %s175_s1, 4  ;;  %s18_s13 = int_to_ptr.vmem [resolvable:$true] %s17_s13  ;;  %s27_s16 = int_to_ptr.hbm [resolvable:$true] %s26_s16 }
   0x4   :  { %20 = dma.hbm_to_vmem [thread:$0]  %s16_s11, 64, %s18_s13, [#allocation3]  }
   0x5   :  { %s148_s17 = smov [#allocation5]  }
   0x6   :  { %s28_s18 = sshll.u32 %s148_s17, 4  ;;  %s29_s18 = int_to_ptr.vmem [resolvable:$true] %s28_s18 }
   0x7   :  { %31 = dma.hbm_to_vmem [thread:$0]  %s27_s16, 16, %s29_s18, [#allocation6]  }
   0x8   :  { %141 = dma.done.wait [#allocation3], 64  }
   0x9   :  { %142 = vsyncadd [#allocation3], 4294967232 }
   0xa   :  { %143 = dma.done.wait [#allocation6], 16  }
   0xb   :  { %144 = vsyncadd [#allocation6], 4294967280  ;;  %s149_s19 = smov [#allocation7]   ;;  %s54_s22 = sshll.u32 %s176_s2, 4  ;;  %v40_v0 = vld [vmem:[#allocation2] sm:$0xf]  ;;  %s55_s22 = int_to_ptr.hbm [resolvable:$true] %s54_s22 }
   0xc   :  { %s52_s0 = sshll.u32 %s149_s19, 4  ;;  %v68_v1 = vld [vmem:[#allocation5] ss:$0 sm:$0xff]  ;;  %s53_s0 = int_to_ptr.vmem [resolvable:$true] %s52_s0 }
   0xd   :  { %v45_v2 = vmul.f32 %v68_v1, %v40_v0 }
   0xf   :  { %46 = vst [vmem:[#allocation7] sm:$0xf] %v45_v2 }
  0x10   :  { %57 = dma.vmem_to_hbm [thread:$0]  %s53_s0, 64, %s55_s22, [#allocation4]  }
  0x11   :  { %145 = dma.done.wait [#allocation4], 64  }
  0x12   :  { %146 = vsyncadd [#allocation4], 4294967232 }
  0x13   :  { %62 = vsyncpa [#allocation3], 1 }
  0x14   :  { %63 = vsyncpa [#allocation6], 1 }
  0x15   :  { %64 = vsyncpa [#allocation4], 1 }

</bundles_post_ra>
